<compile_context>
chip_gen: v6e
topology: v6e:2x2x1
jax: 0.10.0
libtpu: 0.0.40
codegen_flags: <defaults>
</compile_context>

<pallas_src>
import jax
import jax.numpy as jnp
from jax.experimental import pallas as pl
from jax.experimental.pallas import tpu as pltpu

LANE = 128          # lane width: channel dims padded to this for dense stores
BN_EPS = 1e-5
NEG_BIG = -1e30     # mask value for padded class lanes in the softmax (kept f32)


def _pad2(a, rows, cols, dtype=jnp.float32):
    r, c = a.shape
    return jnp.pad(a, ((0, rows - r), (0, cols - c))).astype(dtype)


# ---------------------------------------------------------------------------
# Single fused kernel: 3x(GCNConv -> [ReLU] -> batch-stat BN) -> mean pool
#                      -> Linear -> softmax
# ---------------------------------------------------------------------------
def gcn_fused_kernel(a_ref, x_ref,
                     w0_ref, b0_ref, w1_ref, b1_ref, w2_ref, b2_ref,
                     wc_ref, bc_ref, o_ref):
    n = x_ref.shape[0]
    inv_n = 1.0 / n                        # compile-time constant

    a = a_ref[...]                         # [N, N]  bf16 D^-1/2 (A+I) D^-1/2
    h = x_ref[...].astype(jnp.bfloat16)    # [N, FEAT] bf16 MXU operand

    def gcn_layer(h_bf16, w_ref, b_ref, relu):
        # aggregate before projecting: (A_hat @ h) @ W + b  (== A_hat @ (h W) + b)
        # bf16 operands, f32 accumulation on the MXU.
        agg = jnp.dot(a, h_bf16, preferred_element_type=jnp.float32)
        y = jnp.dot(agg.astype(jnp.bfloat16), w_ref[...],
                    preferred_element_type=jnp.float32) + b_ref[...]
        if relu:
            y = jnp.maximum(y, 0.0)
        # encode() re-creates BatchNorm1d each forward -> fresh module in
        # training mode: batch statistics (biased var), gamma=1, beta=0.
        # One-pass stats: mean and mean-of-squares (f32).
        mu = jnp.sum(y, axis=0, keepdims=True) * inv_n
        msq = jnp.sum(y * y, axis=0, keepdims=True) * inv_n
        var = jnp.maximum(msq - mu * mu, 0.0)
        return (y - mu) * jax.lax.rsqrt(var + BN_EPS)          # f32 [N, 128]

    h1 = gcn_layer(h, w0_ref, b0_ref, relu=True)               # conv0->relu->bn0
    h2 = gcn_layer(h1.astype(jnp.bfloat16), w1_ref, b1_ref, relu=True)
    h3 = gcn_layer(h2.astype(jnp.bfloat16), w2_ref, b2_ref, relu=False)

    # global_mean_pool with batch == zeros -> mean over all nodes (single graph)
    g = jnp.sum(h3, axis=0, keepdims=True) * inv_n             # [1, 128] f32

    # Classifier(n_hidden_layers=0): single Linear; then F.softmax(dim=1).
    # Padded class lanes carry a -1e30 f32 bias so they contribute ~0.
    logits = jnp.dot(g.astype(jnp.bfloat16), wc_ref[...],
                     preferred_element_type=jnp.float32) + bc_ref[...]
    logits = logits - jnp.max(logits, axis=1, keepdims=True)
    e = jnp.exp(logits)
    denom = jnp.sum(e, axis=1, keepdims=True)
    o_ref[...] = e * pl.reciprocal(denom, approx=True)          # [1, 128]


# ---------------------------------------------------------------------------
# Forward pass wrapper (adjacency build + lane padding are glue; one pallas_call)
# ---------------------------------------------------------------------------
@jax.jit
def gcn_forward(x, edge_index, params):
    N = x.shape[0]
    FEAT = x.shape[1]
    C = params["wc"].shape[1]

    # dense adjacency A[dst, src] counting messages src -> dst
    src, dst = edge_index[0], edge_index[1]
    A = jnp.zeros((N, N), jnp.float32).at[dst, src].add(1.0)

    # GCN symmetric normalization with self-loops (built in f32, stored bf16)
    A_tilde = A + jnp.eye(N, dtype=jnp.float32)
    deg = jnp.sum(A_tilde, axis=1)
    dinv = jax.lax.rsqrt(deg)
    A_hat = (dinv[:, None] * A_tilde * dinv[None, :]).astype(jnp.bfloat16)

    # weights -> bf16 MXU operands, output dims lane-padded to 128 (padded lanes
    # stay exactly 0 through the net); biases stay f32.
    w0 = _pad2(params["w0"], FEAT, LANE, jnp.bfloat16)
    w1 = _pad2(params["w1"], LANE, LANE, jnp.bfloat16)
    w2 = _pad2(params["w2"], LANE, LANE, jnp.bfloat16)
    wc = _pad2(params["wc"], LANE, LANE, jnp.bfloat16)
    b0 = _pad2(params["b0"], 1, LANE)
    b1 = _pad2(params["b1"], 1, LANE)
    b2 = _pad2(params["b2"], 1, LANE)
    bc = jnp.concatenate(
        [params["bc"], jnp.full((1, LANE - C), NEG_BIG, jnp.float32)], axis=1)

    args = (A_hat, x, w0, b0, w1, b1, w2, b2, wc, bc)

    # Gridless call => no pipelining => every input is single-buffered in VMEM.
    # Size the scoped-VMEM limit explicitly from the operands + f32 intermediates.
    arg_bytes = sum(int(a.size) * a.dtype.itemsize for a in args)
    interm_bytes = 8 * N * LANE * 4
    vmem_limit = int(min(100 * 1024 * 1024,
                         max(32 * 1024 * 1024, 2 * (arg_bytes + interm_bytes))))

    vmem_spec = pl.BlockSpec(memory_space=pltpu.MemorySpace.VMEM)

    out_padded = pl.pallas_call(
        gcn_fused_kernel,
        out_shape=jax.ShapeDtypeStruct((1, LANE), jnp.float32),
        in_specs=[vmem_spec] * len(args),
        out_specs=vmem_spec,
        compiler_params=pltpu.CompilerParams(vmem_limit_bytes=vmem_limit),
    )(*args)

    return out_padded[:, :C]


# ---------------------------------------------------------------------------
# Deterministic synthetic parameters (shapes follow the torch module, n_layers=3)
# ---------------------------------------------------------------------------
def init_params(key, n_feat, n_hidden, n_classes):
    ks = jax.random.split(key, 8)

    def lin_w(k, din, dout):
        return jax.random.normal(k, (din, dout), jnp.float32) * (1.0 / jnp.sqrt(din))

    return {
        # GCNConv(n_feat -> n_hidden), bias=True
        "w0": lin_w(ks[0], n_feat, n_hidden),
        "b0": jax.random.normal(ks[1], (1, n_hidden), jnp.float32) * 0.01,
        # GCNConv(n_hidden -> n_hidden) x2
        "w1": lin_w(ks[2], n_hidden, n_hidden),
        "b1": jax.random.normal(ks[3], (1, n_hidden), jnp.float32) * 0.01,
        "w2": lin_w(ks[4], n_hidden, n_hidden),
        "b2": jax.random.normal(ks[5], (1, n_hidden), jnp.float32) * 0.01,
        # Classifier with n_hidden_layers=0 -> single Linear(n_hidden -> n_classes)
        "wc": lin_w(ks[6], n_hidden, n_classes),
        "bc": jax.random.normal(ks[7], (1, n_classes), jnp.float32) * 0.01,
    }


if __name__ == "__main__":
    key = jax.random.PRNGKey(0)
    k_feat, k_src, k_dst, k_param = jax.random.split(key, 4)

    # small synthetic graph
    N, FEAT, HID, NCLS, E = 16, 8, 32, 4, 40

    x = jax.random.normal(k_feat, (N, FEAT), jnp.float32)
    src = jax.random.randint(k_src, (E,), 0, N, dtype=jnp.int32)
    dst = jax.random.randint(k_dst, (E,), 0, N, dtype=jnp.int32)
    edge_index = jnp.stack([src, dst], axis=0)

    params = init_params(k_param, FEAT, HID, NCLS)

    out = gcn_forward(x, edge_index, params)
    out = jax.block_until_ready(out)

    assert out.shape == (1, NCLS)
    assert bool(jnp.isfinite(out).all())
    # softmax output; approx-reciprocal denominator => slightly relaxed tolerance
    assert abs(float(jnp.sum(out)) - 1.0) < 5e-3
    print("KERNEL_OK")
</pallas_src>

<mosaic_0001>
module attributes {stable_mosaic.version = 11 : i64} {
  func.func private @main(%arg0: i32) attributes {dimension_semantics = [#tpu.dimension_semantics<core_parallel>], iteration_bounds = array<i64: 2>, tpu.core_type = #tpu.core_type<sc_scalar_subcore>, window_params = []} {
    return
  }
}

module attributes {stable_mosaic.version = 11 : i64} {
  func.func private @main(%arg0: i32) attributes {dimension_semantics = [#tpu.dimension_semantics<core_parallel>], iteration_bounds = array<i64: 2>, tpu.core_type = #tpu.core_type<sc_scalar_subcore>, window_params = []} {
    return
  }
}

module attributes {stable_mosaic.version = 11 : i64} {
  func.func @gcn_fused_kernel(%arg0: memref<16x16xbf16, #tpu.memory_space<vmem>>, %arg1: memref<16x8xf32, #tpu.memory_space<vmem>>, %arg2: memref<8x128xbf16, #tpu.memory_space<vmem>>, %arg3: memref<1x128xf32, #tpu.memory_space<vmem>>, %arg4: memref<128x128xbf16, #tpu.memory_space<vmem>>, %arg5: memref<1x128xf32, #tpu.memory_space<vmem>>, %arg6: memref<128x128xbf16, #tpu.memory_space<vmem>>, %arg7: memref<1x128xf32, #tpu.memory_space<vmem>>, %arg8: memref<128x128xbf16, #tpu.memory_space<vmem>>, %arg9: memref<1x128xf32, #tpu.memory_space<vmem>>, %arg10: memref<1x128xf32, #tpu.memory_space<vmem>>) attributes {dimension_semantics = [], scalar_prefetch = 0 : i64, scratch_operands = 0 : i64, tpu.core_type = #tpu.core_type<tc>} {
    %c0 = arith.constant 0 : index
    %c0_0 = arith.constant 0 : index
    %0 = vector.load %arg0[%c0, %c0_0] : memref<16x16xbf16, #tpu.memory_space<vmem>>, vector<16x16xbf16>
    %c0_1 = arith.constant 0 : index
    %c0_2 = arith.constant 0 : index
    %1 = vector.load %arg1[%c0_1, %c0_2] : memref<16x8xf32, #tpu.memory_space<vmem>>, vector<16x8xf32>
    %2 = arith.truncf %1 : vector<16x8xf32> to vector<16x8xbf16>
    %cst = arith.constant dense<0.000000e+00> : vector<16x8xf32>
    %3 = tpu.matmul %0, %2, %cst {dimension_numbers = #tpu.dot_dimension_numbers<[1], [0], [0], [1], [0, 0, 1, 1], [], []>} : vector<16x16xbf16>, vector<16x8xbf16>, vector<16x8xf32> -> vector<16x8xf32>
    %4 = arith.truncf %3 : vector<16x8xf32> to vector<16x8xbf16>
    %c0_3 = arith.constant 0 : index
    %c0_4 = arith.constant 0 : index
    %5 = vector.load %arg2[%c0_3, %c0_4] : memref<8x128xbf16, #tpu.memory_space<vmem>>, vector<8x128xbf16>
    %cst_5 = arith.constant dense<0.000000e+00> : vector<16x128xf32>
    %6 = tpu.matmul %4, %5, %cst_5 {dimension_numbers = #tpu.dot_dimension_numbers<[1], [0], [0], [1], [0, 0, 1, 1], [], []>} : vector<16x8xbf16>, vector<8x128xbf16>, vector<16x128xf32> -> vector<16x128xf32>
    %c0_6 = arith.constant 0 : index
    %c0_7 = arith.constant 0 : index
    %7 = vector.load %arg3[%c0_6, %c0_7] : memref<1x128xf32, #tpu.memory_space<vmem>>, vector<1x128xf32>
    %8 = vector.broadcast %7 : vector<1x128xf32> to vector<16x128xf32>
    %9 = arith.addf %6, %8 : vector<16x128xf32>
    %cst_8 = arith.constant 0.000000e+00 : f32
    %10 = vector.broadcast %cst_8 : f32 to vector<16x128xf32>
    %11 = arith.maximumf %9, %10 : vector<16x128xf32>
    %cst_9 = arith.constant dense<0.000000e+00> : vector<128xf32>
    %12 = vector.multi_reduction <add>, %11, %cst_9 [0] : vector<16x128xf32> to vector<128xf32>
    %13 = vector.shape_cast %12 : vector<128xf32> to vector<1x128xf32>
    %cst_10 = arith.constant 6.250000e-02 : f32
    %14 = vector.broadcast %cst_10 : f32 to vector<1x128xf32>
    %15 = arith.mulf %13, %14 : vector<1x128xf32>
    %16 = arith.mulf %11, %11 : vector<16x128xf32>
    %cst_11 = arith.constant dense<0.000000e+00> : vector<128xf32>
    %17 = vector.multi_reduction <add>, %16, %cst_11 [0] : vector<16x128xf32> to vector<128xf32>
    %18 = vector.shape_cast %17 : vector<128xf32> to vector<1x128xf32>
    %cst_12 = arith.constant 6.250000e-02 : f32
    %19 = vector.broadcast %cst_12 : f32 to vector<1x128xf32>
    %20 = arith.mulf %18, %19 : vector<1x128xf32>
    %21 = arith.mulf %15, %15 : vector<1x128xf32>
    %22 = arith.subf %20, %21 : vector<1x128xf32>
    %cst_13 = arith.constant 0.000000e+00 : f32
    %23 = vector.broadcast %cst_13 : f32 to vector<1x128xf32>
    %24 = arith.maximumf %22, %23 : vector<1x128xf32>
    %25 = vector.broadcast %15 : vector<1x128xf32> to vector<16x128xf32>
    %26 = arith.subf %11, %25 : vector<16x128xf32>
    %cst_14 = arith.constant 9.99999974E-6 : f32
    %27 = vector.broadcast %cst_14 : f32 to vector<1x128xf32>
    %28 = arith.addf %24, %27 : vector<1x128xf32>
    %29 = math.rsqrt %28 : vector<1x128xf32>
    %30 = vector.broadcast %29 : vector<1x128xf32> to vector<16x128xf32>
    %31 = arith.mulf %26, %30 : vector<16x128xf32>
    %32 = arith.truncf %31 : vector<16x128xf32> to vector<16x128xbf16>
    %cst_15 = arith.constant dense<0.000000e+00> : vector<16x128xf32>
    %33 = tpu.matmul %0, %32, %cst_15 {dimension_numbers = #tpu.dot_dimension_numbers<[1], [0], [0], [1], [0, 0, 1, 1], [], []>} : vector<16x16xbf16>, vector<16x128xbf16>, vector<16x128xf32> -> vector<16x128xf32>
    %34 = arith.truncf %33 : vector<16x128xf32> to vector<16x128xbf16>
    %c0_16 = arith.constant 0 : index
    %c0_17 = arith.constant 0 : index
    %35 = vector.load %arg4[%c0_16, %c0_17] : memref<128x128xbf16, #tpu.memory_space<vmem>>, vector<128x128xbf16>
    %cst_18 = arith.constant dense<0.000000e+00> : vector<16x128xf32>
    %36 = tpu.matmul %34, %35, %cst_18 {dimension_numbers = #tpu.dot_dimension_numbers<[1], [0], [0], [1], [0, 0, 1, 1], [], []>} : vector<16x128xbf16>, vector<128x128xbf16>, vector<16x128xf32> -> vector<16x128xf32>
    %c0_19 = arith.constant 0 : index
    %c0_20 = arith.constant 0 : index
    %37 = vector.load %arg5[%c0_19, %c0_20] : memref<1x128xf32, #tpu.memory_space<vmem>>, vector<1x128xf32>
    %38 = vector.broadcast %37 : vector<1x128xf32> to vector<16x128xf32>
    %39 = arith.addf %36, %38 : vector<16x128xf32>
    %cst_21 = arith.constant 0.000000e+00 : f32
    %40 = vector.broadcast %cst_21 : f32 to vector<16x128xf32>
    %41 = arith.maximumf %39, %40 : vector<16x128xf32>
    %cst_22 = arith.constant dense<0.000000e+00> : vector<128xf32>
    %42 = vector.multi_reduction <add>, %41, %cst_22 [0] : vector<16x128xf32> to vector<128xf32>
    %43 = vector.shape_cast %42 : vector<128xf32> to vector<1x128xf32>
    %cst_23 = arith.constant 6.250000e-02 : f32
    %44 = vector.broadcast %cst_23 : f32 to vector<1x128xf32>
    %45 = arith.mulf %43, %44 : vector<1x128xf32>
    %46 = arith.mulf %41, %41 : vector<16x128xf32>
    %cst_24 = arith.constant dense<0.000000e+00> : vector<128xf32>
    %47 = vector.multi_reduction <add>, %46, %cst_24 [0] : vector<16x128xf32> to vector<128xf32>
    %48 = vector.shape_cast %47 : vector<128xf32> to vector<1x128xf32>
    %cst_25 = arith.constant 6.250000e-02 : f32
    %49 = vector.broadcast %cst_25 : f32 to vector<1x128xf32>
    %50 = arith.mulf %48, %49 : vector<1x128xf32>
    %51 = arith.mulf %45, %45 : vector<1x128xf32>
    %52 = arith.subf %50, %51 : vector<1x128xf32>
    %cst_26 = arith.constant 0.000000e+00 : f32
    %53 = vector.broadcast %cst_26 : f32 to vector<1x128xf32>
    %54 = arith.maximumf %52, %53 : vector<1x128xf32>
    %55 = vector.broadcast %45 : vector<1x128xf32> to vector<16x128xf32>
    %56 = arith.subf %41, %55 : vector<16x128xf32>
    %cst_27 = arith.constant 9.99999974E-6 : f32
    %57 = vector.broadcast %cst_27 : f32 to vector<1x128xf32>
    %58 = arith.addf %54, %57 : vector<1x128xf32>
    %59 = math.rsqrt %58 : vector<1x128xf32>
    %60 = vector.broadcast %59 : vector<1x128xf32> to vector<16x128xf32>
    %61 = arith.mulf %56, %60 : vector<16x128xf32>
    %62 = arith.truncf %61 : vector<16x128xf32> to vector<16x128xbf16>
    %cst_28 = arith.constant dense<0.000000e+00> : vector<16x128xf32>
    %63 = tpu.matmul %0, %62, %cst_28 {dimension_numbers = #tpu.dot_dimension_numbers<[1], [0], [0], [1], [0, 0, 1, 1], [], []>} : vector<16x16xbf16>, vector<16x128xbf16>, vector<16x128xf32> -> vector<16x128xf32>
    %64 = arith.truncf %63 : vector<16x128xf32> to vector<16x128xbf16>
    %c0_29 = arith.constant 0 : index
    %c0_30 = arith.constant 0 : index
    %65 = vector.load %arg6[%c0_29, %c0_30] : memref<128x128xbf16, #tpu.memory_space<vmem>>, vector<128x128xbf16>
    %cst_31 = arith.constant dense<0.000000e+00> : vector<16x128xf32>
    %66 = tpu.matmul %64, %65, %cst_31 {dimension_numbers = #tpu.dot_dimension_numbers<[1], [0], [0], [1], [0, 0, 1, 1], [], []>} : vector<16x128xbf16>, vector<128x128xbf16>, vector<16x128xf32> -> vector<16x128xf32>
    %c0_32 = arith.constant 0 : index
    %c0_33 = arith.constant 0 : index
    %67 = vector.load %arg7[%c0_32, %c0_33] : memref<1x128xf32, #tpu.memory_space<vmem>>, vector<1x128xf32>
    %68 = vector.broadcast %67 : vector<1x128xf32> to vector<16x128xf32>
    %69 = arith.addf %66, %68 : vector<16x128xf32>
    %cst_34 = arith.constant dense<0.000000e+00> : vector<128xf32>
    %70 = vector.multi_reduction <add>, %69, %cst_34 [0] : vector<16x128xf32> to vector<128xf32>
    %71 = vector.shape_cast %70 : vector<128xf32> to vector<1x128xf32>
    %cst_35 = arith.constant 6.250000e-02 : f32
    %72 = vector.broadcast %cst_35 : f32 to vector<1x128xf32>
    %73 = arith.mulf %71, %72 : vector<1x128xf32>
    %74 = arith.mulf %69, %69 : vector<16x128xf32>
    %cst_36 = arith.constant dense<0.000000e+00> : vector<128xf32>
    %75 = vector.multi_reduction <add>, %74, %cst_36 [0] : vector<16x128xf32> to vector<128xf32>
    %76 = vector.shape_cast %75 : vector<128xf32> to vector<1x128xf32>
    %cst_37 = arith.constant 6.250000e-02 : f32
    %77 = vector.broadcast %cst_37 : f32 to vector<1x128xf32>
    %78 = arith.mulf %76, %77 : vector<1x128xf32>
    %79 = arith.mulf %73, %73 : vector<1x128xf32>
    %80 = arith.subf %78, %79 : vector<1x128xf32>
    %cst_38 = arith.constant 0.000000e+00 : f32
    %81 = vector.broadcast %cst_38 : f32 to vector<1x128xf32>
    %82 = arith.maximumf %80, %81 : vector<1x128xf32>
    %83 = vector.broadcast %73 : vector<1x128xf32> to vector<16x128xf32>
    %84 = arith.subf %69, %83 : vector<16x128xf32>
    %cst_39 = arith.constant 9.99999974E-6 : f32
    %85 = vector.broadcast %cst_39 : f32 to vector<1x128xf32>
    %86 = arith.addf %82, %85 : vector<1x128xf32>
    %87 = math.rsqrt %86 : vector<1x128xf32>
    %88 = vector.broadcast %87 : vector<1x128xf32> to vector<16x128xf32>
    %89 = arith.mulf %84, %88 : vector<16x128xf32>
    %cst_40 = arith.constant dense<0.000000e+00> : vector<128xf32>
    %90 = vector.multi_reduction <add>, %89, %cst_40 [0] : vector<16x128xf32> to vector<128xf32>
    %91 = vector.shape_cast %90 : vector<128xf32> to vector<1x128xf32>
    %cst_41 = arith.constant 6.250000e-02 : f32
    %92 = vector.broadcast %cst_41 : f32 to vector<1x128xf32>
    %93 = arith.mulf %91, %92 : vector<1x128xf32>
    %94 = arith.truncf %93 : vector<1x128xf32> to vector<1x128xbf16>
    %c0_42 = arith.constant 0 : index
    %c0_43 = arith.constant 0 : index
    %95 = vector.load %arg8[%c0_42, %c0_43] : memref<128x128xbf16, #tpu.memory_space<vmem>>, vector<128x128xbf16>
    %cst_44 = arith.constant dense<0.000000e+00> : vector<1x128xf32>
    %96 = tpu.matmul %94, %95, %cst_44 {dimension_numbers = #tpu.dot_dimension_numbers<[1], [0], [0], [1], [0, 0, 1, 1], [], []>} : vector<1x128xbf16>, vector<128x128xbf16>, vector<1x128xf32> -> vector<1x128xf32>
    %c0_45 = arith.constant 0 : index
    %c0_46 = arith.constant 0 : index
    %97 = vector.load %arg9[%c0_45, %c0_46] : memref<1x128xf32, #tpu.memory_space<vmem>>, vector<1x128xf32>
    %98 = arith.addf %96, %97 : vector<1x128xf32>
    %cst_47 = arith.constant dense<0xFF800000> : vector<1xf32>
    %99 = vector.multi_reduction <maximumf>, %98, %cst_47 [1] : vector<1x128xf32> to vector<1xf32>
    %100 = vector.shape_cast %99 : vector<1xf32> to vector<1x1xf32>
    %101 = vector.broadcast %100 : vector<1x1xf32> to vector<1x128xf32>
    %102 = arith.subf %98, %101 : vector<1x128xf32>
    %103 = math.exp %102 : vector<1x128xf32>
    %cst_48 = arith.constant dense<0.000000e+00> : vector<1xf32>
    %104 = vector.multi_reduction <add>, %103, %cst_48 [1] : vector<1x128xf32> to vector<1xf32>
    %105 = vector.shape_cast %104 : vector<1xf32> to vector<1x1xf32>
    %106 = tpu.reciprocal %105 {approx = true} : vector<1x1xf32> -> vector<1x1xf32>
    %107 = vector.broadcast %106 : vector<1x1xf32> to vector<1x128xf32>
    %108 = arith.mulf %103, %107 : vector<1x128xf32>
    %c0_49 = arith.constant 0 : index
    %c0_50 = arith.constant 0 : index
    %109 = vector.load %arg10[%c0_49, %c0_50] : memref<1x128xf32, #tpu.memory_space<vmem>>, vector<1x128xf32>
    tpu.vector_store %arg10[%c0_49, %c0_50], %108 {strides = array<i32>} : memref<1x128xf32, #tpu.memory_space<vmem>>, vector<1x128xf32>,
    return
  }
}

</mosaic_0001>

<bundles_post_ra>
// kernel: gcn_forward.1
= control target key start
LH: loop header
LB: loop body
LE: loop exit
PB: predicated region body
PF: predicated region fallthrough
CT: control target
= control target key end

     0   :  { %v897_v2 = vmov 0.0   ;;  %vm898_vm0 = vmmov 0   ;;  %vm47_vm1 = vcmask 130048   ;;  %s1104_s0 = inlined_call_operand.vmem [shape: bf16[16,16], index: 0, kind: input, shape index: {}]   ;;  %s1105_s1 = inlined_call_operand.vmem [shape: f32[16,8], index: 1, kind: input, shape index: {}]   ;;  %s1106_s2 = inlined_call_operand.vmem [shape: bf16[8,128], index: 2, kind: input, shape index: {}]   ;;  %s1107_s3 = inlined_call_operand.vmem [shape: f32[1,128], index: 3, kind: input, shape index: {}]   ;;  %s1108_s4 = inlined_call_operand.vmem [shape: bf16[128,128], index: 4, kind: input, shape index: {}]   ;;  %s1109_s5 = inlined_call_operand.vmem [shape: f32[1,128], index: 5, kind: input, shape index: {}]   ;;  %s1110_s6 = inlined_call_operand.vmem [shape: bf16[128,128], index: 6, kind: input, shape index: {}]   ;;  %s1111_s7 = inlined_call_operand.vmem [shape: f32[1,128], index: 7, kind: input, shape index: {}]   ;;  %s1112_s8 = inlined_call_operand.vmem [shape: bf16[128,128], index: 8, kind: input, shape index: {}]   ;;  %s1113_s9 = inlined_call_operand.vmem [shape: f32[1,128], index: 9, kind: input, shape index: {}]   ;;  %s1114_s10 = inlined_call_operand.hbm [shape: f32[1,128], index: 10, kind: output, shape index: {}]  }
   0x1   :  { %v39_v0 = vld [vmem:[%s1105_s1] sm:$0xff]  ;;  %v40_v1 = vld [vmem:[%s1105_s1 + $0x8] sm:$0xff]  ;;  %753 = vmatprep.subr.bf16.mxu0 %v897_v2  ;;  %755 = vmatprep.mubr.msk.bf16.mxu0 %vm898_vm0, %v897_v2 }
   0x2   :  { %v41_v3 = vpack.c.bf16 %v40_v1, %v39_v0  ;;  %v967_v4 = vld [vmem:[%s1104_s0] sm:$0xff]   ;;  %771 = vmatprep.subr.bf16.mxu1 %v897_v2  ;;  %787 = vmatprep.mubr.msk.bf16.mxu1 %vm898_vm0, %v897_v2 }
   0x4   :  { %754 = vmatpush3.bf16.msra.mxu0 %v41_v3 }
   0x5   :  { %759 = vmatprep.subr.bf16.mxu0 %v897_v2 }
   0x7   :  { %756 = vmatmul.mubr.msk.bf16.vlgmr.msra.gmra.mxu0 %vm47_vm1, %v967_v4 }
   0x8   :  { %761 = vmatprep.mubr.msk.bf16.mxu0 %vm898_vm0, %v897_v2 }
   0x9   :  { %15 = vsyncpa [#allocation3], 0  ;;  %v93_v5 = vld [vmem:[%s1106_s2] sm:$0xf]  ;;  %vm105_vm2 = vcmask 1043456   ;;  %vm101_vm3 = vcmask 64512  }
   0xa   :  { %v107_v6 = vsel %vm105_vm2, %v93_v5, 0  ;;  %v841_v12 = vld [vmem:[%s1108_s4 + $0x38] sm:$0xff]   ;;  %v842_v13 = vld [vmem:[%s1108_s4 + $0x30] sm:$0xff]   ;;  %v843_v14 = vld [vmem:[%s1108_s4 + $0x28] sm:$0xff]   ;;  %vm659_vm4 = vcmask 1040384   ;;  %s899_s20 = smov [#allocation2]  }
   0xb   :  { %760 = vmatpush3.bf16.msra.mxu0 %v107_v6  ;;  %772 = vmatpush3.bf16.msra.mxu1 %v841_v12  ;;  %v844_v15 = vld [vmem:[%s1108_s4 + $0x20] sm:$0xff]   ;;  %v845_v16 = vld [vmem:[%s1108_s4 + $0x18] sm:$0xff]   ;;  %v846_v17 = vld [vmem:[%s1108_s4 + $0x10] sm:$0xff]   ;;  %s678_s2 = sshll.u32 %s899_s20, 4  ;;  %s679_s2 = int_to_ptr.vmem [resolvable:$true] %s678_s2 }
   0xc   :  { %765 = vmatprep.subr.bf16.mxu0 %v897_v2  ;;  %773 = vmatprep.subr.bf16.mxu1 %v897_v2  ;;  %v688_v18 = vld [vmem:[%s1107_s3] ss:$0 sm:$0xff]  ;;  %v847_v55 = vld [vmem:[%s1108_s4 + $0x8] sm:$0xff]   ;;  %s879_s21 = scalar_lea.vmem %s679_s2, 32  ;;  %p880_p1 = scmp.lt.s32.totalorder %s679_s2, %s679_s2 }
   0xd   :  { %v848_v56 = vld [vmem:[%s1108_s4] sm:$0xff]  }
   0xe   :  { %v691_v62 = vld [vmem:[%s1109_s5] ss:$0 sm:$0xff] }
   0xf   :  { %774 = vmatpush3.bf16.msra.mxu1 %v842_v13 }
  0x10   :  { %775 = vmatprep.subr.bf16.mxu1 %v897_v2 }
  0x13   :  { %776 = vmatpush3.bf16.msra.mxu1 %v843_v14 }
  0x14   :  { %777 = vmatprep.subr.bf16.mxu1 %v897_v2 }
  0x17   :  { %778 = vmatpush3.bf16.msra.mxu1 %v844_v15 }
  0x18   :  { %779 = vmatprep.subr.bf16.mxu1 %v897_v2 }
  0x1b   :  { %780 = vmatpush3.bf16.msra.mxu1 %v845_v16 }
  0x1c   :  { %781 = vmatprep.subr.bf16.mxu1 %v897_v2 }
  0x1f   :  { %782 = vmatpush3.bf16.msra.mxu1 %v846_v17 }
  0x20   :  { %783 = vmatprep.subr.bf16.mxu1 %v897_v2 }
  0x23   :  { %784 = vmatpush3.bf16.msra.mxu1 %v847_v55  ;;  %v863_v55 = vld [vmem:[%s1112_s8 + $0x8] sm:$0xff]  }
  0x24   :  { %785 = vmatprep.subr.bf16.mxu1 %v897_v2 }
  0x27   :  { %786 = vmatpush3.bf16.msra.mxu1 %v848_v56  ;;  %v864_v56 = vld [vmem:[%s1112_s8] sm:$0xff]  }
  0x28   :  { %817 = vmatprep.subr.bf16.mxu1 %v897_v2 }
  0xc7   :  { %v85_v7 = vpop.f32.mrf.mxu0 }
  0xc9   :  { %v757_v8 = vpop.f32.mrf.mxu0 }
  0xcb   :  { %v88_v9 = vpop.f32.mrf.mxu0 }
  0xcc   :  { %v92_v10 = vpack.c.bf16 %v88_v9, %v85_v7 }
  0xcd   :  { %v758_v11 = vpop.f32.mrf.mxu0 }
  0xce   :  { %762 = vmatmul.mubr.msk.bf16.vlgmr.msra.gmra.mxu0 %vm101_vm3, %v92_v10 }
  0xcf   :  { %767 = vmatprep.mubr.msk.bf16.mxu0 %vm898_vm0, %v897_v2 }
 0x18e   :  { %v143_v19 = vpop.f32.mrf.mxu0 }
 0x18f   :  { %v144_v20 = vadd.f32 %v688_v18, %v143_v19 }
 0x190   :  { %v763_v21 = vpop.f32.mrf.mxu0 }
 0x191   :  { %v150_v23 = vmax.f32 %v144_v20, 0.0 }
 0x192   :  { %v146_v22 = vpop.f32.mrf.mxu0 }
 0x193   :  { %v147_v24 = vadd.f32 %v688_v18, %v146_v22  ;;  %v160_v27 = vmul.f32 %v150_v23, %v150_v23 }
 0x194   :  { %v764_v25 = vpop.f32.mrf.mxu0 }
 0x195   :  { %v151_v26 = vmax.f32 %v147_v24, 0.0 }
 0x197   :  { %v152_v28 = vadd.f32 %v151_v26, %v150_v23  ;;  %v161_v29 = vmul.f32 %v151_v26, %v151_v26 }
 0x199   :  { %v153_v30 = vrot.slane %v152_v28, 4  ;;  %v162_v31 = vadd.f32 %v161_v29, %v160_v27 }
 0x19b   :  { %v154_v32 = vadd.f32 %v153_v30, %v152_v28  ;;  %v163_v33 = vrot.slane %v162_v31, 4 }
 0x19d   :  { %v155_v34 = vrot.slane %v154_v32, 2  ;;  %v164_v35 = vadd.f32 %v163_v33, %v162_v31 }
 0x19f   :  { %v156_v36 = vadd.f32 %v155_v34, %v154_v32  ;;  %v165_v37 = vrot.slane %v164_v35, 2 }
 0x1a1   :  { %v157_v38 = vrot.slane %v156_v36, 1  ;;  %v166_v39 = vadd.f32 %v165_v37, %v164_v35  ;;  %v849_v37 = vld [vmem:[%s1110_s6 + $0x38] sm:$0xff]  }
 0x1a3   :  { %v158_v40 = vadd.f32 %v157_v38, %v156_v36  ;;  %v167_v41 = vrot.slane %v166_v39, 1  ;;  %v850_v38 = vld [vmem:[%s1110_s6 + $0x30] sm:$0xff]  }
 0x1a5   :  { %v159_v42 = vmul.f32 0.0625, %v158_v40  ;;  %v168_v43 = vadd.f32 %v167_v41, %v166_v39  ;;  %v851_v39 = vld [vmem:[%s1110_s6 + $0x28] sm:$0xff]   ;;  %v853_v40 = vld [vmem:[%s1110_s6 + $0x18] sm:$0xff]   ;;  %v854_v41 = vld [vmem:[%s1110_s6 + $0x10] sm:$0xff]  }
 0x1a7   :  { %v169_v44 = vmul.f32 0.0625, %v168_v43  ;;  %v170_v45 = vmul.f32 %v159_v42, %v159_v42  ;;  %v174_v49 = vsub.f32 %v151_v26, %v159_v42  ;;  %v173_v50 = vsub.f32 %v150_v23, %v159_v42  ;;  %v855_v42 = vld [vmem:[%s1110_s6 + $0x8] sm:$0xff]   ;;  %v856_v43 = vld [vmem:[%s1110_s6] sm:$0xff]  }
 0x1a9   :  { %v171_v46 = vsub.f32 %v169_v44, %v170_v45 }
 0x1ab   :  { %v172_v47 = vmax.f32 %v171_v46, 0.0 }
 0x1ad   :  { %v175_v48 = vadd.f32 1e-05, %v172_v47 }
 0x1af   :  { %865 = vrsqrt.f32 %v175_v48 }
 0x1bc   :  { %v866_v51 = vpop.eup %865 }
 0x1bd   :  { %v178_v52 = vmul.f32 %v866_v51, %v174_v49  ;;  %v177_v53 = vmul.f32 %v866_v51, %v173_v50  ;;  %v857_v49 = vld [vmem:[%s1112_s8 + $0x38] sm:$0xff]   ;;  %v858_v50 = vld [vmem:[%s1112_s8 + $0x30] sm:$0xff]   ;;  %v859_v51 = vld [vmem:[%s1112_s8 + $0x28] sm:$0xff]  }
 0x1bf   :  { %v179_v54 = vpack.c.bf16 %v178_v52, %v177_v53  ;;  %v860_v52 = vld [vmem:[%s1112_s8 + $0x20] sm:$0xff]   ;;  %v861_v53 = vld [vmem:[%s1112_s8 + $0x18] sm:$0xff]  }
 0x1c1   :  { %766 = vmatpush3.bf16.msra.mxu0 %v179_v54  ;;  %v862_v54 = vld [vmem:[%s1112_s8 + $0x10] sm:$0xff]  }
 0x1c2   :  { %791 = vmatprep.subr.bf16.mxu0 %v897_v2 }
 0x1c4   :  { %768 = vmatmul.mubr.msk.bf16.vlgmr.msra.gmra.mxu0 %vm47_vm1, %v967_v4 }
 0x1c5   :  { %793 = vmatprep.mubr.msk.bf16.mxu0 %vm898_vm0, %v897_v2 }
 0x284   :  { %v214_v57 = vpop.f32.mrf.mxu0 }
 0x286   :  { %v769_v58 = vpop.f32.mrf.mxu0 }
 0x288   :  { %v217_v59 = vpop.f32.mrf.mxu0 }
 0x289   :  { %v221_v60 = vpack.c.bf16 %v217_v59, %v214_v57  ;;  %v701_v57 = vld [vmem:[%s1111_s7] ss:$0 sm:$0xff] }
 0x28a   :  { %v770_v61 = vpop.f32.mrf.mxu0 }
 0x28b   :  { %788 = vmatmul.mubr.bf16.vlgmr.msra.gmra.mxu1 %v221_v60 }
 0x28c   :  { %833 = vmatprep.mubr.msk.bf16.mxu1 %vm898_vm0, %v897_v2  ;;  %818 = vmatpush3.bf16.msra.mxu1 %v857_v49 }
 0x28d   :  { %819 = vmatprep.subr.bf16.mxu1 %v897_v2 }
 0x290   :  { %820 = vmatpush3.bf16.msra.mxu1 %v858_v50 }
 0x291   :  { %821 = vmatprep.subr.bf16.mxu1 %v897_v2 }
 0x294   :  { %822 = vmatpush3.bf16.msra.mxu1 %v859_v51 }
 0x295   :  { %823 = vmatprep.subr.bf16.mxu1 %v897_v2 }
 0x298   :  { %824 = vmatpush3.bf16.msra.mxu1 %v860_v52 }
 0x299   :  { %825 = vmatprep.subr.bf16.mxu1 %v897_v2 }
 0x29c   :  { %826 = vmatpush3.bf16.msra.mxu1 %v861_v53 }
 0x29d   :  { %827 = vmatprep.subr.bf16.mxu1 %v897_v2 }
 0x2a0   :  { %828 = vmatpush3.bf16.msra.mxu1 %v862_v54 }
 0x2a1   :  { %829 = vmatprep.subr.bf16.mxu1 %v897_v2 }
 0x2a4   :  { %830 = vmatpush3.bf16.msra.mxu1 %v863_v55 }
 0x2a5   :  { %831 = vmatprep.subr.bf16.mxu1 %v897_v2 }
 0x2a8   :  { %832 = vmatpush3.bf16.msra.mxu1 %v864_v56 }
 0x34b   :  { %v327_v63 = vpop.f32.mrf.mxu1 }
 0x34c   :  { %v328_v0 = vadd.f32 %v691_v62, %v327_v63 }
 0x34d   :  { %v789_v1 = vpop.f32.mrf.mxu1 }
 0x34e   :  { %v334_v5 = vmax.f32 %v328_v0, 0.0 }
 0x34f   :  { %v330_v3 = vpop.f32.mrf.mxu1 }
 0x350   :  { %v331_v6 = vadd.f32 %v691_v62, %v330_v3  ;;  %v344_v9 = vmul.f32 %v334_v5, %v334_v5 }
 0x351   :  { %v790_v7 = vpop.f32.mrf.mxu1 }
 0x352   :  { %v335_v8 = vmax.f32 %v331_v6, 0.0 }
 0x354   :  { %v336_v10 = vadd.f32 %v335_v8, %v334_v5  ;;  %v345_v11 = vmul.f32 %v335_v8, %v335_v8 }
 0x356   :  { %v337_v12 = vrot.slane %v336_v10, 4  ;;  %v346_v13 = vadd.f32 %v345_v11, %v344_v9 }
 0x358   :  { %v338_v14 = vadd.f32 %v337_v12, %v336_v10  ;;  %v347_v15 = vrot.slane %v346_v13, 4 }
 0x35a   :  { %v339_v16 = vrot.slane %v338_v14, 2  ;;  %v348_v17 = vadd.f32 %v347_v15, %v346_v13 }
 0x35c   :  { %v340_v18 = vadd.f32 %v339_v16, %v338_v14  ;;  %v349_v19 = vrot.slane %v348_v17, 2 }
 0x35e   :  { %v341_v20 = vrot.slane %v340_v18, 1  ;;  %v350_v21 = vadd.f32 %v349_v19, %v348_v17 }
 0x360   :  { %v342_v22 = vadd.f32 %v341_v20, %v340_v18  ;;  %v351_v23 = vrot.slane %v350_v21, 1 }
 0x362   :  { %v343_v24 = vmul.f32 0.0625, %v342_v22  ;;  %v352_v25 = vadd.f32 %v351_v23, %v350_v21 }
 0x364   :  { %v353_v26 = vmul.f32 0.0625, %v352_v25  ;;  %v354_v27 = vmul.f32 %v343_v24, %v343_v24  ;;  %v358_v31 = vsub.f32 %v335_v8, %v343_v24  ;;  %v357_v32 = vsub.f32 %v334_v5, %v343_v24 }
 0x366   :  { %v355_v28 = vsub.f32 %v353_v26, %v354_v27 }
 0x368   :  { %v356_v29 = vmax.f32 %v355_v28, 0.0 }
 0x36a   :  { %v359_v30 = vadd.f32 1e-05, %v356_v29 }
 0x36c   :  { %867 = vrsqrt.f32 %v359_v30 }
 0x379   :  { %v868_v33 = vpop.eup %867 }
 0x37a   :  { %v362_v34 = vmul.f32 %v868_v33, %v358_v31  ;;  %v361_v35 = vmul.f32 %v868_v33, %v357_v32 }
 0x37c   :  { %v363_v36 = vpack.c.bf16 %v362_v34, %v361_v35 }
 0x37e   :  { %792 = vmatpush3.bf16.msra.mxu0 %v363_v36 }
 0x37f   :  { %797 = vmatprep.subr.bf16.mxu0 %v897_v2 }
 0x381   :  { %794 = vmatmul.mubr.msk.bf16.vlgmr.msra.gmra.mxu0 %vm47_vm1, %v967_v4  ;;  %v852_v4 = vld [vmem:[%s1110_s6 + $0x20] sm:$0xff]  }
 0x382   :  { %798 = vmatpush3.bf16.msra.mxu0 %v849_v37  ;;  %813 = vmatprep.mubr.msk.bf16.mxu0 %vm898_vm0, %v897_v2  ;;  %v570_v37 = vld [vmem:[%s1113_s9] sm:$0x1]  ;;  %s875_s9 = scalar_lea.vmem %s679_s2, 16 }
 0x383   :  { %799 = vmatprep.subr.bf16.mxu0 %v897_v2  ;;  %p876_p0 = scmp.ne.s32.totalorder %s679_s2, %s875_s9  ;;  %p881_p2 = scmp.lt.s32.totalorder %s879_s21, %s875_s9 }
 0x385   :  { %p882_p3 = por %p881_p2, %p880_p1 }
 0x386   :  { %800 = vmatpush3.bf16.msra.mxu0 %v850_v38 }
 0x387   :  { %801 = vmatprep.subr.bf16.mxu0 %v897_v2  ;;  %p883_p4 = pnand %p882_p3, %p876_p0 }
 0x38a   :  { %802 = vmatpush3.bf16.msra.mxu0 %v851_v39 }
 0x38b   :  { %803 = vmatprep.subr.bf16.mxu0 %v897_v2 }
 0x38e   :  { %804 = vmatpush3.bf16.msra.mxu0 %v852_v4 }
 0x38f   :  { %805 = vmatprep.subr.bf16.mxu0 %v897_v2 }
 0x392   :  { %806 = vmatpush3.bf16.msra.mxu0 %v853_v40 }
 0x393   :  { %807 = vmatprep.subr.bf16.mxu0 %v897_v2 }
 0x396   :  { %808 = vmatpush3.bf16.msra.mxu0 %v854_v41 }
 0x397   :  { %809 = vmatprep.subr.bf16.mxu0 %v897_v2 }
 0x39a   :  { %810 = vmatpush3.bf16.msra.mxu0 %v855_v42 }
 0x39b   :  { %811 = vmatprep.subr.bf16.mxu0 %v897_v2 }
 0x39e   :  { %812 = vmatpush3.bf16.msra.mxu0 %v856_v43 }
 0x441   :  { %v398_v44 = vpop.f32.mrf.mxu0 }
 0x443   :  { %v795_v45 = vpop.f32.mrf.mxu0 }
 0x445   :  { %v401_v46 = vpop.f32.mrf.mxu0 }
 0x446   :  { %v405_v47 = vpack.c.bf16 %v401_v46, %v398_v44 }
 0x447   :  { %v796_v48 = vpop.f32.mrf.mxu0 }
 0x448   :  { %814 = vmatmul.mubr.bf16.vlgmr.msra.gmra.mxu0 %v405_v47 }
 0x508   :  { %v511_v58 = vpop.f32.mrf.mxu0 }
 0x509   :  { %v512_v60 = vadd.f32 %v701_v57, %v511_v58 }
 0x50a   :  { %v815_v59 = vpop.f32.mrf.mxu0 }
 0x50b   :  { %v526_v0 = vmul.f32 %v512_v60, %v512_v60 }
 0x50c   :  { %v514_v61 = vpop.f32.mrf.mxu0 }
 0x50d   :  { %v515_v62 = vadd.f32 %v701_v57, %v514_v61 }
 0x50e   :  { %v816_v63 = vpop.f32.mrf.mxu0 }
 0x50f   :  { %v518_v1 = vadd.f32 %v515_v62, %v512_v60  ;;  %v527_v3 = vmul.f32 %v515_v62, %v515_v62 }
 0x511   :  { %v519_v5 = vrot.slane %v518_v1, 4  ;;  %v528_v6 = vadd.f32 %v527_v3, %v526_v0 }
 0x513   :  { %v520_v7 = vadd.f32 %v519_v5, %v518_v1  ;;  %v529_v8 = vrot.slane %v528_v6, 4 }
 0x515   :  { %v521_v9 = vrot.slane %v520_v7, 2  ;;  %v530_v2 = vadd.f32 %v529_v8, %v528_v6 }
 0x517   :  { %v522_v10 = vadd.f32 %v521_v9, %v520_v7  ;;  %v531_v11 = vrot.slane %v530_v2, 2 }
 0x519   :  { %v523_v12 = vrot.slane %v522_v10, 1  ;;  %v532_v13 = vadd.f32 %v531_v11, %v530_v2 }
 0x51b   :  { %v524_v14 = vadd.f32 %v523_v12, %v522_v10  ;;  %v533_v15 = vrot.slane %v532_v13, 1 }
 0x51d   :  { %v525_v16 = vmul.f32 0.0625, %v524_v14  ;;  %v534_v17 = vadd.f32 %v533_v15, %v532_v13 }
 0x51f   :  { %v535_v18 = vmul.f32 0.0625, %v534_v17  ;;  %v536_v19 = vmul.f32 %v525_v16, %v525_v16  ;;  %v539_v23 = vsub.f32 %v512_v60, %v525_v16  ;;  %v540_v24 = vsub.f32 %v515_v62, %v525_v16 }
 0x521   :  { %v537_v20 = vsub.f32 %v535_v18, %v536_v19 }
 0x523   :  { %v538_v21 = vmax.f32 %v537_v20, 0.0 }
 0x525   :  { %v541_v22 = vadd.f32 1e-05, %v538_v21 }
 0x527   :  { %869 = vrsqrt.f32 %v541_v22 }
 0x534   :  { %v870_v25 = vpop.eup %869 }
 0x535   :  { %v543_v26 = vmul.f32 %v870_v25, %v539_v23  ;;  %v544_v27 = vmul.f32 %v870_v25, %v540_v24 }
 0x537   :  { %v545_v28 = vadd.f32 %v544_v27, %v543_v26 }
 0x539   :  { %v546_v29 = vrot.slane %v545_v28, 4 }
 0x53b   :  { %v547_v30 = vadd.f32 %v546_v29, %v545_v28 }
 0x53d   :  { %v548_v31 = vrot.slane %v547_v30, 2 }
 0x53f   :  { %v549_v32 = vadd.f32 %v548_v31, %v547_v30 }
 0x541   :  { %v550_v33 = vrot.slane %v549_v32, 1 }
 0x543   :  { %v551_v34 = vadd.f32 %v550_v33, %v549_v32 }
 0x545   :  { %v552_v35 = vmul.f32 0.0625, %v551_v34 }
 0x547   :  { %v553_v36 = vpack.c.bf16 %v552_v35, %v552_v35 }
 0x549   :  { %834 = vmatmul.mubr.bf16.vlgmr.msra.gmra.mxu1 %v553_v36 }
 0x609   :  { %v653_v38 = vpop.f32.mrf.mxu1 }
 0x60a   :  { %v654_v39 = vadd.f32 %v653_v38, %v570_v37 }
 0x60b   :  { %v835_v4 = vpop.f32.mrf.mxu1 }
 0x60c   :  { %v660_v40 = vsel %vm659_vm4, %v654_v39, -inf }
 0x60d   :  { %661 = vmax.xlane.f32.xlu0 %v660_v40  ;;  %v656_v41 = vpop.f32.mrf.mxu1 }
 0x60f   :  { %v836_v42 = vpop.f32.mrf.mxu1 }
 0x696   :  { %v662_v43 = vpop.xlane.xlu0 %661 }
 0x697   :  { %v663_v44 = vsub.f32 %v654_v39, %v662_v43 }
 0x699   :  { %v664_v45 = vmul.f32 1.442695, %v663_v44 }
 0x69b   :  { %871 = vpow2.f32 %v664_v45 }
 0x6a8   :  { %v872_v46 = vpop.eup %871 }
 0x6a9   :  { %v666_v47 = vsel %vm659_vm4, %v872_v46, 0.0 }
 0x6aa   :  { %667 = vadd.xlane.f32.xlu0 %v666_v47 }
 0x733   :  { %v668_v48 = vpop.xlane.xlu0 %667 }
 0x734   :  { %873 = vrcp.f32 %v668_v48 }
 0x741   :  { %v874_v49 = vpop.eup %873 }
 0x742   :  { %v670_v50 = vmul.f32 %v874_v49, %v872_v46 }
 0x744   :  { %671 = vst [vmem:[#allocation2] sm:$0x1] %v670_v50 }
 0x745   :  { %886 = shalt.err (!%p883_p4)
}
 0x746   :  { %681 = dma.vmem_to_hbm [thread:$0]  %s679_s2, 16, %s1114_s10, [#allocation3]  }
 0x747   :  { %895 = dma.done.wait [#allocation3], 16  }
 0x748   :  { %896 = vsyncadd [#allocation3], 4294967280 }
 0x749   :  { %685 = vsyncpa [#allocation3], 1 }

</bundles_post_ra>
